<compile_context>
chip_gen: v6e
topology: v6e:2x2x1
jax: 0.10.0
libtpu: 0.0.40
codegen_flags: <defaults>
</compile_context>

<pallas_src>
import jax
import jax.numpy as jnp
from jax.experimental import pallas as pl
from jax.experimental.pallas import tpu as pltpu


def _copy_kernel(x_ref, o_ref):
    # Straight tile copy; the slice ("chomp") is expressed in the BlockSpecs.
    o_ref[...] = x_ref[...]


def _round_up(x: int, m: int) -> int:
    return (x + m - 1) // m * m


def _tile_byte_budget() -> int:
    """Per-tile byte budget (in+out double-buffered => working set ~= 4x this)."""
    try:
        vmem = pltpu.get_tpu_info().vmem_capacity_bytes
    except Exception:
        vmem = 64 << 20  # conservative (v7x-sized) if the query is unavailable
    if vmem >= (96 << 20):   # v5e / v6e: 128 MiB physical VMEM -> ~32 MiB WS
        return 8 << 20
    return 4 << 20           # v7x: 64 MiB physical VMEM -> ~16 MiB WS


def chomp1d(x: jax.Array, chomp_size: int, *, use_pallas=None) -> jax.Array:
    """Pallas equivalent of Chomp1d.forward: x[:, :, :-chomp_size]."""
    assert chomp_size > 0, "chomp_size must be positive (matches the PyTorch slice)"
    n, c, l = x.shape
    l_out = l - chomp_size
    assert l_out > 0, "chomp_size must be smaller than the sequence length"

    rows = n * c
    itemsize = jnp.dtype(x.dtype).itemsize
    out_bytes = rows * l_out * itemsize

    # Small-shape fallback: narrow/tiny outputs are dominated by pallas_call
    # overhead and masked partial stores; XLA's fused slice wins there.
    small = (l_out < 128) or (out_bytes < (1 << 20))
    if use_pallas is None:
        use_pallas = not small
    if not use_pallas:
        return x[:, :, :l_out]

    # Free view only for the default NCL-contiguous layout (otherwise XLA
    # materializes a copy here — perf hazard, not a correctness one).
    x2 = x.reshape(rows, l)

    # Dtype-aware sublane multiple (f32: 8, bf16: 16, int8/fp8: 32).
    sub_mult = {4: 8, 2: 16, 1: 32}.get(itemsize, 8)

    # --- Row tiling: <= 256 rows/tile, balanced blocks. ---
    max_tr = 256
    n_row_blocks = pl.cdiv(rows, max_tr)
    tr = _round_up(pl.cdiv(rows, n_row_blocks), sub_mult)

    # --- Lane tiling: byte-budgeted, multiple of 128, balanced blocks. ---
    tile_bytes = _tile_byte_budget()
    tl = max(128, (tile_bytes // (tr * itemsize)) // 128 * 128)
    tl = min(tl, _round_up(l_out, 128))
    n_lane_blocks = pl.cdiv(l_out, tl)
    if n_lane_blocks > 1:
        # Re-balance so the final edge tile isn't tiny.
        tl = _round_up(pl.cdiv(l_out, n_lane_blocks), 128)

    # --- Megacore (v7x): ensure some "parallel" axis has >= 2 balanced blocks. ---
    if pl.cdiv(rows, tr) == 1 and pl.cdiv(l_out, tl) == 1:
        if rows >= 2 * sub_mult:
            tr = _round_up(pl.cdiv(rows, 2), sub_mult)
        elif l_out >= 2 * 128:
            tl = _round_up(pl.cdiv(l_out, 2), 128)

    grid = (pl.cdiv(rows, tr), pl.cdiv(l_out, tl))

    out2 = pl.pallas_call(
        _copy_kernel,
        out_shape=jax.ShapeDtypeStruct((rows, l_out), x.dtype),
        grid=grid,
        # Identical blocked index maps for input and output: the grid only
        # covers ceil(L_out / tl) lane-blocks, so the chomped tail is never
        # addressed except inside the (masked) final edge tile.
        in_specs=[pl.BlockSpec((tr, tl), lambda i, j: (i, j))],
        out_specs=pl.BlockSpec((tr, tl), lambda i, j: (i, j)),
        compiler_params=pltpu.CompilerParams(
            dimension_semantics=("parallel", "parallel"),
            # 4 buffers x tile + headroom; v5e's scoped default (16 MiB) is
            # too small for the 8 MiB tiles used on 128-MiB-VMEM chips.
            vmem_limit_bytes=max(32 << 20, 5 * tile_bytes),
        ),
        # Pure bandwidth op: 0 flops, read + write of the chomped activation.
        cost_estimate=pl.CostEstimate(
            flops=0, transcendentals=0, bytes_accessed=2 * out_bytes),
    )(x2)

    return out2.reshape(n, c, l_out)


if __name__ == "__main__":
    key = jax.random.PRNGKey(0)

    # 1) Small shape consistent with the module (N, C, L); auto path takes the
    #    small-shape fallback (plain XLA slice).
    N, C, L = 2, 4, 16
    chomp_size = 3  # Chomp1d has no learnable params; chomp_size is static.
    x = jax.random.normal(key, (N, C, L), dtype=jnp.float32)
    out = jax.block_until_ready(chomp1d(x, chomp_size))
    ref = x[:, :, :-chomp_size]
    assert out.shape == (N, C, L - chomp_size), out.shape
    assert jnp.array_equal(out, ref), "mismatch vs reference slice (small, fallback)"

    # 2) Same small shape forced through the Pallas kernel (exercises the
    #    masked edge tile / block-larger-than-array path).
    out_p = jax.block_until_ready(chomp1d(x, chomp_size, use_pallas=True))
    assert jnp.array_equal(out_p, ref), "mismatch vs reference slice (small, pallas)"

    # 3) Medium shape taking the Pallas path automatically: bf16 packing,
    #    l_out not a multiple of 128 (masked lane edge), multi-block grid.
    x2 = jax.random.normal(jax.random.PRNGKey(1), (2, 128, 2304), dtype=jnp.bfloat16)
    out2 = jax.block_until_ready(chomp1d(x2, 104))
    assert jnp.array_equal(out2, x2[:, :, :-104]), "mismatch vs reference slice (bf16 tiled)"

    print("KERNEL_OK")
</pallas_src>

<mosaic_0001>
module attributes {stable_mosaic.version = 11 : i64} {
  func.func @_copy_kernel(%arg0: i32, %arg1: i32, %arg2: memref<8x128xf32, #tpu.memory_space<vmem>>, %arg3: memref<8x128xf32, #tpu.memory_space<vmem>>) attributes {dimension_semantics = [#tpu.dimension_semantics<parallel>, #tpu.dimension_semantics<parallel>], iteration_bounds = array<i64: 1, 1>, scalar_prefetch = 0 : i64, scratch_operands = 0 : i64, tpu.core_type = #tpu.core_type<tc>, window_params = [{transform_indices = @transform_0, window_bounds = array<i64: 8, 128>}, {transform_indices = @transform_1, window_bounds = array<i64: 8, 128>}]} {
    %c0 = arith.constant 0 : index
    %c0_0 = arith.constant 0 : index
    %0 = vector.load %arg2[%c0, %c0_0] : memref<8x128xf32, #tpu.memory_space<vmem>>, vector<8x128xf32>
    %c0_1 = arith.constant 0 : index
    %c0_2 = arith.constant 0 : index
    %1 = vector.load %arg3[%c0_1, %c0_2] : memref<8x128xf32, #tpu.memory_space<vmem>>, vector<8x128xf32>
    tpu.vector_store %arg3[%c0_1, %c0_2], %0 {strides = array<i32>} : memref<8x128xf32, #tpu.memory_space<vmem>>, vector<8x128xf32>,
    return
  }
  func.func @transform_0(%arg0: i32, %arg1: i32) -> (i32, i32) {
    %c0_i32 = arith.constant 0 : i32
    return %arg0, %arg1 : i32, i32
  }
  func.func @transform_1(%arg0: i32, %arg1: i32) -> (i32, i32) {
    %c0_i32 = arith.constant 0 : i32
    return %arg0, %arg1 : i32, i32
  }
}

</mosaic_0001>

<bundles_post_ra>
// kernel: tpu_custom_call.1
= control target key start
LH: loop header
LB: loop body
LE: loop exit
PB: predicated region body
PF: predicated region fallthrough
CT: control target
= control target key end

     0   :  { %6 = vsyncpa [#allocation3], 0  ;;  %s102_s0 = inlined_call_operand.hbm [shape: f32[8,16], index: 0, kind: input, shape index: {}]   ;;  %s103_s1 = inlined_call_operand.hbm [shape: f32[8,13], index: 1, kind: output, shape index: {}]  }
   0x1   :  { %7 = vsyncpa [#allocation4], 0  ;;  %s84_s6 = smov [#allocation2]  }
   0x2   :  { %s14_s7 = sshll.u32 %s84_s6, 4  ;;  %s15_s7 = int_to_ptr.vmem [resolvable:$true] %s14_s7 }
   0x3   :  { %s48_s8 = scalar_lea.vmem %s15_s7, 128  ;;  %p53_p1 = scmp.lt.s32.totalorder %s15_s7, %s15_s7 }
   0x4   :  { %p49_p0 = scmp.ne.s32.totalorder %s15_s7, %s48_s8  ;;  %p54_p2 = scmp.lt.s32.totalorder %s48_s8, %s48_s8 }
   0x6   :  { %p55_p3 = por %p54_p2, %p53_p1 }
   0x8   :  { %p56_p4 = pnand %p55_p3, %p49_p0 }
   0xa   :  { %59 = shalt.err (!%p56_p4)
}
   0xb   :  { %17 = dma.hbm_to_vmem [thread:$0]  %s102_s0, 128, %s15_s7, [#allocation3]  }
   0xc   :  { %80 = dma.done.wait [#allocation3], 128  }
   0xd   :  { %81 = vsyncadd [#allocation3], 4294967168  ;;  %s85_s11 = smov [#allocation5]   ;;  %v21_v0 = vld [vmem:[#allocation2] sm:$0xff] }
   0xe   :  { %s29_s12 = sshll.u32 %s85_s11, 4  ;;  %22 = vst [vmem:[#allocation5] sm:$0xff] %v21_v0  ;;  %s30_s12 = int_to_ptr.vmem [resolvable:$true] %s29_s12 }
   0xf   :  { %s60_s13 = scalar_lea.vmem %s30_s12, 128  ;;  %p65_p6 = scmp.lt.s32.totalorder %s30_s12, %s30_s12 }
  0x10   :  { %p61_p5 = scmp.ne.s32.totalorder %s30_s12, %s60_s13  ;;  %p66_p7 = scmp.lt.s32.totalorder %s60_s13, %s60_s13 }
  0x12   :  { %p67_p8 = por %p66_p7, %p65_p6 }
  0x14   :  { %p68_p9 = pnand %p67_p8, %p61_p5 }
  0x16   :  { %71 = shalt.err (!%p68_p9)
}
  0x17   :  { %32 = dma.vmem_to_hbm [thread:$0]  %s30_s12, 128, %s103_s1, [#allocation4]  }
  0x18   :  { %82 = dma.done.wait [#allocation4], 128  }
  0x19   :  { %83 = vsyncadd [#allocation4], 4294967168 }
  0x1a   :  { %36 = vsyncpa [#allocation3], 1 }
  0x1b   :  { %37 = vsyncpa [#allocation4], 1 }

</bundles_post_ra>
